<compile_context>
chip_gen: v5e
topology: v5e:2x2
jax: 0.10.0
libtpu: 0.0.40
codegen_flags: <defaults>
</compile_context>

<pallas_src>
import jax
import jax.numpy as jnp
from jax.experimental import pallas as pl
from jax.experimental.pallas import tpu as pltpu

LN_EPS = 1e-5                      # torch.nn.LayerNorm default
_PREC = jax.lax.Precision.HIGHEST  # exact f32 matmuls on both kernel and ref


def _round_up(x, m):
    return ((x + m - 1) // m) * m


def _make_kernel(hidden_dim: int):
    """Kernel closure; hidden_dim is the TRUE (unpadded) LayerNorm width."""
    inv_h = 1.0 / float(hidden_dim)

    def kernel(feat_ref, w1_ref, g1_ref, b1_ref, w2_ref, g2_ref, b2_ref,
               wht_ref, bht_ref, out_ref):
        x = feat_ref[...].astype(jnp.float32)          # (tile_n, S*D)
        hp = w1_ref.shape[1]                           # padded hidden width
        lane = jax.lax.broadcasted_iota(jnp.int32, (1, hp), 1)
        lane_ok = lane < hidden_dim                    # (1, hp) mask of real lanes

        def layernorm(v, g, b):
            # Padded lanes of v are exactly zero (zero weight columns), so the
            # plain sum with the true-H denominator gives the unpadded mean.
            mean = jnp.sum(v, axis=-1, keepdims=True) * inv_h
            vc = v - mean
            vc_m = jnp.where(lane_ok, vc, 0.0)         # keep pads out of the variance
            var = jnp.sum(vc_m * vc_m, axis=-1, keepdims=True) * inv_h
            inv = jax.lax.rsqrt(var + LN_EPS)
            # gamma = beta = 0 in padded lanes -> output stays exactly 0 there.
            return vc * inv * g + b

        # Layer 1: (slot-sum + Linear) fused into one MXU matmul, LN, ReLU.
        h = jnp.dot(x, w1_ref[...], preferred_element_type=jnp.float32,
                    precision=_PREC)
        h = jnp.maximum(layernorm(h, g1_ref[...], b1_ref[...]), 0.0)

        # Layer 2: Linear(H,H, no bias) + LN + ReLU.
        h = jnp.dot(h, w2_ref[...], preferred_element_type=jnp.float32,
                    precision=_PREC)
        h = jnp.maximum(layernorm(h, g2_ref[...], b2_ref[...]), 0.0)

        # Head, computed transposed: (C, Hp) x (tile_n, Hp) contracting the last
        # dims -> (C, tile_n).  Stores are lane-dense with no padded columns.
        r_t = jax.lax.dot_general(wht_ref[...], h, (((1,), (1,)), ((), ())),
                                  preferred_element_type=jnp.float32,
                                  precision=_PREC)
        out_ref[...] = (r_t + bht_ref[...]).astype(out_ref.dtype)

    return kernel


def reward_decoder_forward(feat, prepared, *, tile_n=1024):
    """feat: (B, T, S, D) -> reward: (B, T, num_classes), float32."""
    B, T, S, D = feat.shape
    assert S == prepared["num_slots"] and D == prepared["input_dim"]
    H = prepared["hidden_dim"]
    Hp = prepared["w1"].shape[1]
    C = prepared["wht"].shape[0]

    N = B * T
    SD = S * D
    feat_flat = feat.reshape(N, SD)                    # lane-dense input rows

    # Row tile: multiple of 128 (it is the output lane dim), aiming for >=4 grid
    # steps when N is large enough (2 pipelined steps per v7x TensorCore).  For
    # small N fall back to a single exact full block (full-dim BlockSpec escape).
    tile_n = _round_up(min(tile_n, max(128, pl.cdiv(N, 4))), 128)
    if tile_n >= N:
        tile_n = N
    grid = (pl.cdiv(N, tile_n),)   # ragged tail (if any) masked by Pallas

    full = lambda shape: pl.BlockSpec(shape, lambda i: (0,) * len(shape))

    out_t = pl.pallas_call(
        _make_kernel(H),
        out_shape=jax.ShapeDtypeStruct((C, N), jnp.float32),
        grid_spec=pltpu.PrefetchScalarGridSpec(
            num_scalar_prefetch=0,
            grid=grid,
            in_specs=[
                pl.BlockSpec((tile_n, SD), lambda i: (i, 0)),   # feat rows
                full((SD, Hp)),                                 # w1 (slot-folded)
                full((1, Hp)), full((1, Hp)),                   # g1, b1
                full((Hp, Hp)),                                 # w2
                full((1, Hp)), full((1, Hp)),                   # g2, b2
                full((C, Hp)),                                  # wh^T
                full((C, 1)),                                   # bias (C,1)
            ],
            out_specs=pl.BlockSpec((C, tile_n), lambda i: (0, i)),
        ),
        compiler_params=pltpu.CompilerParams(
            dimension_semantics=("parallel",),
            vmem_limit_bytes=32 * 1024 * 1024,  # footprint ~1-2 MiB; safe on all gens
        ),
    )(
        feat_flat,
        prepared["w1"], prepared["g1"], prepared["b1"],
        prepared["w2"], prepared["g2"], prepared["b2"],
        prepared["wht"], prepared["bht"],
    )
    return out_t.T.reshape(B, T, C)


def make_params(key, input_dim, hidden_dim, num_classes):
    """Raw parameters, same shapes as the PyTorch module (weights as (in, out))."""
    k1, k2, k3, k4 = jax.random.split(key, 4)
    s1 = 1.0 / jnp.sqrt(input_dim)
    s2 = 1.0 / jnp.sqrt(hidden_dim)
    return {
        "w1": jax.random.uniform(k1, (input_dim, hidden_dim), jnp.float32, -s1, s1),
        "g1": jnp.ones((1, hidden_dim), jnp.float32),
        "b1": jnp.zeros((1, hidden_dim), jnp.float32),
        "w2": jax.random.uniform(k2, (hidden_dim, hidden_dim), jnp.float32, -s2, s2),
        "g2": jnp.ones((1, hidden_dim), jnp.float32),
        "b2": jnp.zeros((1, hidden_dim), jnp.float32),
        "wh": jax.random.uniform(k3, (hidden_dim, num_classes), jnp.float32, -s2, s2),
        "bh": jax.random.uniform(k4, (1, num_classes), jnp.float32, -s2, s2),
    }


def prepare_params(params, num_slots):
    """One-time kernel-layout prep (hoisted off the per-call path):
       fold the slot sum into w1, zero-pad hidden dim to 128 lanes, transpose
       the head weight for the transposed output store."""
    D, H = params["w1"].shape
    C = params["wh"].shape[1]
    Hp = _round_up(H, 128)

    def pad_cols(a):  # (r, H) -> (r, Hp), zeros in padded lanes
        return jnp.zeros((a.shape[0], Hp), jnp.float32).at[:, :H].set(a)

    return {
        "w1": pad_cols(jnp.tile(params["w1"], (num_slots, 1))),          # (S*D, Hp)
        "g1": pad_cols(params["g1"]), "b1": pad_cols(params["b1"]),
        "w2": jnp.zeros((Hp, Hp), jnp.float32).at[:H, :H].set(params["w2"]),
        "g2": pad_cols(params["g2"]), "b2": pad_cols(params["b2"]),
        "wht": jnp.zeros((C, Hp), jnp.float32).at[:, :H].set(params["wh"].T),
        "bht": params["bh"].reshape(C, 1).astype(jnp.float32),
        "hidden_dim": H, "input_dim": D, "num_slots": num_slots, "num_classes": C,
    }


def reward_decoder_reference(feat, params):
    """Pure-JAX reference (mirrors the PyTorch forward) for correctness checks."""
    x = jnp.sum(feat.astype(jnp.float32), axis=-2)

    def ln(v, g, b):
        m = jnp.mean(v, axis=-1, keepdims=True)
        vc = v - m
        var = jnp.mean(vc * vc, axis=-1, keepdims=True)
        return vc * jax.lax.rsqrt(var + LN_EPS) * g[0] + b[0]

    h = jnp.dot(x, params["w1"], precision=_PREC)
    h = jnp.maximum(ln(h, params["g1"], params["b1"]), 0.0)
    h = jnp.dot(h, params["w2"], precision=_PREC)
    h = jnp.maximum(ln(h, params["g2"], params["b2"]), 0.0)
    return jnp.dot(h, params["wh"], precision=_PREC) + params["bh"][0]


if __name__ == "__main__":
    # Small shapes consistent with the module's forward:
    #   feat: (batch=2, seq=8, num_slots=4, input_dim=32)
    B, T, S = 2, 8, 4
    input_dim, hidden_dim, num_classes = 32, 32, 8
    embedding_size = 16  # constructor arg, unused by forward()

    key = jax.random.PRNGKey(0)
    kf, kp = jax.random.split(key)
    feat = jax.random.normal(kf, (B, T, S, input_dim), dtype=jnp.float32)

    raw = make_params(kp, input_dim, hidden_dim, num_classes)
    prepared = prepare_params(raw, num_slots=S)        # one-time weight prep

    fwd = jax.jit(lambda f: reward_decoder_forward(f, prepared))
    out = jax.block_until_ready(fwd(feat))

    ref = reward_decoder_reference(feat, raw)
    assert out.shape == (B, T, num_classes), out.shape
    max_err = float(jnp.max(jnp.abs(out - ref)))
    assert jnp.allclose(out, ref, atol=1e-4, rtol=1e-4), max_err

    print("KERNEL_OK")
</pallas_src>

<mosaic_0001>
module attributes {stable_mosaic.version = 11 : i64} {
  func.func @kernel(%arg0: i32, %arg1: memref<16x128xf32, #tpu.memory_space<vmem>>, %arg2: memref<128x128xf32, #tpu.memory_space<vmem>>, %arg3: memref<1x128xf32, #tpu.memory_space<vmem>>, %arg4: memref<1x128xf32, #tpu.memory_space<vmem>>, %arg5: memref<128x128xf32, #tpu.memory_space<vmem>>, %arg6: memref<1x128xf32, #tpu.memory_space<vmem>>, %arg7: memref<1x128xf32, #tpu.memory_space<vmem>>, %arg8: memref<8x128xf32, #tpu.memory_space<vmem>>, %arg9: memref<8x1xf32, #tpu.memory_space<vmem>>, %arg10: memref<8x16xf32, #tpu.memory_space<vmem>>) attributes {dimension_semantics = [#tpu.dimension_semantics<parallel>], iteration_bounds = array<i64: 1>, scalar_prefetch = 0 : i64, scratch_operands = 0 : i64, tpu.core_type = #tpu.core_type<tc>, window_params = [{transform_indices = @transform_0, window_bounds = array<i64: 16, 128>}, {pipeline_mode = #tpu.pipeline_mode<synchronous>, transform_indices = @transform_1, window_bounds = array<i64: 128, 128>}, {pipeline_mode = #tpu.pipeline_mode<synchronous>, transform_indices = @transform_2, window_bounds = array<i64: 1, 128>}, {pipeline_mode = #tpu.pipeline_mode<synchronous>, transform_indices = @transform_3, window_bounds = array<i64: 1, 128>}, {pipeline_mode = #tpu.pipeline_mode<synchronous>, transform_indices = @transform_4, window_bounds = array<i64: 128, 128>}, {pipeline_mode = #tpu.pipeline_mode<synchronous>, transform_indices = @transform_5, window_bounds = array<i64: 1, 128>}, {pipeline_mode = #tpu.pipeline_mode<synchronous>, transform_indices = @transform_6, window_bounds = array<i64: 1, 128>}, {pipeline_mode = #tpu.pipeline_mode<synchronous>, transform_indices = @transform_7, window_bounds = array<i64: 8, 128>}, {pipeline_mode = #tpu.pipeline_mode<synchronous>, transform_indices = @transform_8, window_bounds = array<i64: 8, 1>}, {transform_indices = @transform_9, window_bounds = array<i64: 8, 16>}]} {
    %c0 = arith.constant 0 : index
    %c0_0 = arith.constant 0 : index
    %0 = vector.load %arg1[%c0, %c0_0] : memref<16x128xf32, #tpu.memory_space<vmem>>, vector<16x128xf32>
    %1 = tpu.iota {dimensions = array<i32: 1>} : vector<1x128xi32>
    %c32_i32 = arith.constant 32 : i32
    %2 = vector.broadcast %c32_i32 : i32 to vector<1x128xi32>
    %3 = arith.cmpi slt, %1, %2 : vector<1x128xi32>
    %c0_1 = arith.constant 0 : index
    %c0_2 = arith.constant 0 : index
    %4 = vector.load %arg2[%c0_1, %c0_2] : memref<128x128xf32, #tpu.memory_space<vmem>>, vector<128x128xf32>
    %cst = arith.constant dense<0.000000e+00> : vector<16x128xf32>
    %5 = tpu.matmul %0, %4, %cst {dimension_numbers = #tpu.dot_dimension_numbers<[1], [0], [0], [1], [0, 0, 1, 1], [], []>, precision = #tpu.contract_precision<fp32>} : vector<16x128xf32>, vector<128x128xf32>, vector<16x128xf32> -> vector<16x128xf32>
    %c0_3 = arith.constant 0 : index
    %c0_4 = arith.constant 0 : index
    %6 = vector.load %arg3[%c0_3, %c0_4] : memref<1x128xf32, #tpu.memory_space<vmem>>, vector<1x128xf32>
    %c0_5 = arith.constant 0 : index
    %c0_6 = arith.constant 0 : index
    %7 = vector.load %arg4[%c0_5, %c0_6] : memref<1x128xf32, #tpu.memory_space<vmem>>, vector<1x128xf32>
    %cst_7 = arith.constant dense<0.000000e+00> : vector<16xf32>
    %8 = vector.multi_reduction <add>, %5, %cst_7 [1] : vector<16x128xf32> to vector<16xf32>
    %9 = vector.shape_cast %8 : vector<16xf32> to vector<16x1xf32>
    %cst_8 = arith.constant 3.125000e-02 : f32
    %10 = vector.broadcast %cst_8 : f32 to vector<16x1xf32>
    %11 = arith.mulf %9, %10 : vector<16x1xf32>
    %12 = vector.broadcast %11 : vector<16x1xf32> to vector<16x128xf32>
    %13 = arith.subf %5, %12 : vector<16x128xf32>
    %cst_9 = arith.constant 0.000000e+00 : f32
    %14 = vector.shape_cast %3 : vector<1x128xi1> to vector<1x128xi1>
    %15 = vector.broadcast %14 : vector<1x128xi1> to vector<16x128xi1>
    %16 = vector.broadcast %cst_9 : f32 to vector<16x128xf32>
    %17 = arith.select %15, %13, %16 : vector<16x128xi1>, vector<16x128xf32>
    %18 = arith.mulf %17, %17 : vector<16x128xf32>
    %cst_10 = arith.constant dense<0.000000e+00> : vector<16xf32>
    %19 = vector.multi_reduction <add>, %18, %cst_10 [1] : vector<16x128xf32> to vector<16xf32>
    %20 = vector.shape_cast %19 : vector<16xf32> to vector<16x1xf32>
    %cst_11 = arith.constant 3.125000e-02 : f32
    %21 = vector.broadcast %cst_11 : f32 to vector<16x1xf32>
    %22 = arith.mulf %20, %21 : vector<16x1xf32>
    %cst_12 = arith.constant 9.99999974E-6 : f32
    %23 = vector.broadcast %cst_12 : f32 to vector<16x1xf32>
    %24 = arith.addf %22, %23 : vector<16x1xf32>
    %25 = math.rsqrt %24 : vector<16x1xf32>
    %26 = vector.broadcast %25 : vector<16x1xf32> to vector<16x128xf32>
    %27 = arith.mulf %13, %26 : vector<16x128xf32>
    %28 = vector.broadcast %6 : vector<1x128xf32> to vector<16x128xf32>
    %29 = arith.mulf %27, %28 : vector<16x128xf32>
    %30 = vector.broadcast %7 : vector<1x128xf32> to vector<16x128xf32>
    %31 = arith.addf %29, %30 : vector<16x128xf32>
    %cst_13 = arith.constant 0.000000e+00 : f32
    %32 = vector.broadcast %cst_13 : f32 to vector<16x128xf32>
    %33 = arith.maximumf %31, %32 : vector<16x128xf32>
    %c0_14 = arith.constant 0 : index
    %c0_15 = arith.constant 0 : index
    %34 = vector.load %arg5[%c0_14, %c0_15] : memref<128x128xf32, #tpu.memory_space<vmem>>, vector<128x128xf32>
    %cst_16 = arith.constant dense<0.000000e+00> : vector<16x128xf32>
    %35 = tpu.matmul %33, %34, %cst_16 {dimension_numbers = #tpu.dot_dimension_numbers<[1], [0], [0], [1], [0, 0, 1, 1], [], []>, precision = #tpu.contract_precision<fp32>} : vector<16x128xf32>, vector<128x128xf32>, vector<16x128xf32> -> vector<16x128xf32>
    %c0_17 = arith.constant 0 : index
    %c0_18 = arith.constant 0 : index
    %36 = vector.load %arg6[%c0_17, %c0_18] : memref<1x128xf32, #tpu.memory_space<vmem>>, vector<1x128xf32>
    %c0_19 = arith.constant 0 : index
    %c0_20 = arith.constant 0 : index
    %37 = vector.load %arg7[%c0_19, %c0_20] : memref<1x128xf32, #tpu.memory_space<vmem>>, vector<1x128xf32>
    %cst_21 = arith.constant dense<0.000000e+00> : vector<16xf32>
    %38 = vector.multi_reduction <add>, %35, %cst_21 [1] : vector<16x128xf32> to vector<16xf32>
    %39 = vector.shape_cast %38 : vector<16xf32> to vector<16x1xf32>
    %cst_22 = arith.constant 3.125000e-02 : f32
    %40 = vector.broadcast %cst_22 : f32 to vector<16x1xf32>
    %41 = arith.mulf %39, %40 : vector<16x1xf32>
    %42 = vector.broadcast %41 : vector<16x1xf32> to vector<16x128xf32>
    %43 = arith.subf %35, %42 : vector<16x128xf32>
    %cst_23 = arith.constant 0.000000e+00 : f32
    %44 = vector.shape_cast %3 : vector<1x128xi1> to vector<1x128xi1>
    %45 = vector.broadcast %44 : vector<1x128xi1> to vector<16x128xi1>
    %46 = vector.broadcast %cst_23 : f32 to vector<16x128xf32>
    %47 = arith.select %45, %43, %46 : vector<16x128xi1>, vector<16x128xf32>
    %48 = arith.mulf %47, %47 : vector<16x128xf32>
    %cst_24 = arith.constant dense<0.000000e+00> : vector<16xf32>
    %49 = vector.multi_reduction <add>, %48, %cst_24 [1] : vector<16x128xf32> to vector<16xf32>
    %50 = vector.shape_cast %49 : vector<16xf32> to vector<16x1xf32>
    %cst_25 = arith.constant 3.125000e-02 : f32
    %51 = vector.broadcast %cst_25 : f32 to vector<16x1xf32>
    %52 = arith.mulf %50, %51 : vector<16x1xf32>
    %cst_26 = arith.constant 9.99999974E-6 : f32
    %53 = vector.broadcast %cst_26 : f32 to vector<16x1xf32>
    %54 = arith.addf %52, %53 : vector<16x1xf32>
    %55 = math.rsqrt %54 : vector<16x1xf32>
    %56 = vector.broadcast %55 : vector<16x1xf32> to vector<16x128xf32>
    %57 = arith.mulf %43, %56 : vector<16x128xf32>
    %58 = vector.broadcast %36 : vector<1x128xf32> to vector<16x128xf32>
    %59 = arith.mulf %57, %58 : vector<16x128xf32>
    %60 = vector.broadcast %37 : vector<1x128xf32> to vector<16x128xf32>
    %61 = arith.addf %59, %60 : vector<16x128xf32>
    %cst_27 = arith.constant 0.000000e+00 : f32
    %62 = vector.broadcast %cst_27 : f32 to vector<16x128xf32>
    %63 = arith.maximumf %61, %62 : vector<16x128xf32>
    %c0_28 = arith.constant 0 : index
    %c0_29 = arith.constant 0 : index
    %64 = vector.load %arg8[%c0_28, %c0_29] : memref<8x128xf32, #tpu.memory_space<vmem>>, vector<8x128xf32>
    %cst_30 = arith.constant dense<0.000000e+00> : vector<8x16xf32>
    %65 = tpu.matmul %64, %63, %cst_30 {dimension_numbers = #tpu.dot_dimension_numbers<[1], [1], [0], [0], [0, 0, 1, 0], [], []>, precision = #tpu.contract_precision<fp32>} : vector<8x128xf32>, vector<16x128xf32>, vector<8x16xf32> -> vector<8x16xf32>
    %c0_31 = arith.constant 0 : index
    %c0_32 = arith.constant 0 : index
    %66 = vector.load %arg9[%c0_31, %c0_32] : memref<8x1xf32, #tpu.memory_space<vmem>>, vector<8x1xf32>
    %67 = vector.broadcast %66 : vector<8x1xf32> to vector<8x16xf32>
    %68 = arith.addf %65, %67 : vector<8x16xf32>
    %c0_33 = arith.constant 0 : index
    %c0_34 = arith.constant 0 : index
    %69 = vector.load %arg10[%c0_33, %c0_34] : memref<8x16xf32, #tpu.memory_space<vmem>>, vector<8x16xf32>
    tpu.vector_store %arg10[%c0_33, %c0_34], %68 {strides = array<i32>} : memref<8x16xf32, #tpu.memory_space<vmem>>, vector<8x16xf32>,
    return
  }
  func.func @transform_0(%arg0: i32) -> (i32, i32) {
    %c0_i32 = arith.constant 0 : i32
    %c0_i32_0 = arith.constant 0 : i32
    return %arg0, %c0_i32 : i32, i32
  }
  func.func @transform_1(%arg0: i32) -> (i32, i32) {
    %c0_i32 = arith.constant 0 : i32
    %c0_i32_0 = arith.constant 0 : i32
    %c0_i32_1 = arith.constant 0 : i32
    return %c0_i32, %c0_i32_0 : i32, i32
  }
  func.func @transform_2(%arg0: i32) -> (i32, i32) {
    %c0_i32 = arith.constant 0 : i32
    %c0_i32_0 = arith.constant 0 : i32
    %c0_i32_1 = arith.constant 0 : i32
    return %c0_i32, %c0_i32_0 : i32, i32
  }
  func.func @transform_3(%arg0: i32) -> (i32, i32) {
    %c0_i32 = arith.constant 0 : i32
    %c0_i32_0 = arith.constant 0 : i32
    %c0_i32_1 = arith.constant 0 : i32
    return %c0_i32, %c0_i32_0 : i32, i32
  }
  func.func @transform_4(%arg0: i32) -> (i32, i32) {
    %c0_i32 = arith.constant 0 : i32
    %c0_i32_0 = arith.constant 0 : i32
    %c0_i32_1 = arith.constant 0 : i32
    return %c0_i32, %c0_i32_0 : i32, i32
  }
  func.func @transform_5(%arg0: i32) -> (i32, i32) {
    %c0_i32 = arith.constant 0 : i32
    %c0_i32_0 = arith.constant 0 : i32
    %c0_i32_1 = arith.constant 0 : i32
    return %c0_i32, %c0_i32_0 : i32, i32
  }
  func.func @transform_6(%arg0: i32) -> (i32, i32) {
    %c0_i32 = arith.constant 0 : i32
    %c0_i32_0 = arith.constant 0 : i32
    %c0_i32_1 = arith.constant 0 : i32
    return %c0_i32, %c0_i32_0 : i32, i32
  }
  func.func @transform_7(%arg0: i32) -> (i32, i32) {
    %c0_i32 = arith.constant 0 : i32
    %c0_i32_0 = arith.constant 0 : i32
    %c0_i32_1 = arith.constant 0 : i32
    return %c0_i32, %c0_i32_0 : i32, i32
  }
  func.func @transform_8(%arg0: i32) -> (i32, i32) {
    %c0_i32 = arith.constant 0 : i32
    %c0_i32_0 = arith.constant 0 : i32
    %c0_i32_1 = arith.constant 0 : i32
    return %c0_i32, %c0_i32_0 : i32, i32
  }
  func.func @transform_9(%arg0: i32) -> (i32, i32) {
    %c0_i32 = arith.constant 0 : i32
    %c0_i32_0 = arith.constant 0 : i32
    return %c0_i32, %arg0 : i32, i32
  }
}

</mosaic_0001>

<bundles_post_ra>
// kernel: _lambda_.1
= control target key start
LH: loop header
LB: loop body
LE: loop exit
PB: predicated region body
PF: predicated region fallthrough
CT: control target
= control target key end

     0   :  { %14 = vsyncpa [#allocation3], 0  ;;  %s1786_s0 = inlined_call_operand.vmem [shape: f32[16,128], index: 0, kind: input, shape index: {}]   ;;  %s1787_s1 = inlined_call_operand.hbm [shape: f32[128,128], index: 1, kind: input, shape index: {}]   ;;  %s1788_s2 = inlined_call_operand.vmem [shape: f32[1,128], index: 2, kind: input, shape index: {}, may-alias: {2,5}]   ;;  %s1789_s3 = inlined_call_operand.vmem [shape: f32[1,128], index: 3, kind: input, shape index: {}, may-alias: {3,6}]   ;;  %s1790_s4 = inlined_call_operand.hbm [shape: f32[128,128], index: 4, kind: input, shape index: {}]   ;;  %s1791_s5 = inlined_call_operand.vmem [shape: f32[1,128], index: 5, kind: input, shape index: {}, may-alias: {2,5}]   ;;  %s1792_s6 = inlined_call_operand.vmem [shape: f32[1,128], index: 6, kind: input, shape index: {}, may-alias: {3,6}]   ;;  %s1793_s7 = inlined_call_operand.vmem [shape: f32[8,128], index: 7, kind: input, shape index: {}]   ;;  %s1794_s8 = inlined_call_operand.vmem [shape: f32[8,1], index: 8, kind: input, shape index: {}]   ;;  %s1795_s9 = inlined_call_operand.vmem [shape: f32[8,16], index: 9, kind: output, shape index: {}]  }
   0x1   :  { %s22_s11 = sshll.u32 %s1787_s1, 4  ;;  %s23_s11 = int_to_ptr.hbm [resolvable:$true] %s22_s11 }
   0x2   :  { %15 = vsyncpa [#allocation5], 0  ;;  %s1204_s12 = smov [#allocation2]   ;;  %s39_s16 = sshll.u32 %s1790_s4, 4  ;;  %s40_s16 = int_to_ptr.hbm [resolvable:$true] %s39_s16 }
   0x3   :  { %s24_s13 = sshll.u32 %s1204_s12, 4  ;;  %s1205_s17 = smov 128   ;;  %s25_s13 = int_to_ptr.vmem [resolvable:$true] %s24_s13 }
   0x4   :  { %s1206_s18 = smov 8   ;;  %s1207_s19 = smov [#allocation4]  }
   0x5   :  { %30 = dma.hbm_to_vmem [thread:$0]  %s23_s11, 2048, %s25_s13, [#allocation3], %s1205_s17, %s1205_s17, %s1206_s18  }
   0x6   :  { %s41_s20 = sshll.u32 %s1207_s19, 4  ;;  %s42_s20 = int_to_ptr.vmem [resolvable:$true] %s41_s20 }
   0x7   :  { %47 = dma.hbm_to_vmem [thread:$0]  %s40_s16, 2048, %s42_s20, [#allocation5], %s1205_s17, %s1205_s17, %s1206_s18  }
   0x8   :  { %1200 = dma.done.wait [#allocation3], 2048  }
   0x9   :  { %1201 = vsyncadd [#allocation3], 4294965248 }
   0xa   :  { %1202 = dma.done.wait [#allocation5], 2048  }
   0xb   :  { %1203 = vsyncadd [#allocation5], 4294965248  ;;  %v84_v0 = vld [vmem:[#allocation2 + $0x78] sm:$0xff]  ;;  %v83_v1 = vld [vmem:[#allocation2 + $0x70] sm:$0xff]  ;;  %vm1125_vm13 = vcmask 130048  }
   0xc   :  { %v82_v2 = vld [vmem:[#allocation2 + $0x68] sm:$0xff]  ;;  %v1265_v3 = vand.u32 4294901760, %v84_v0  ;;  %v1267_v4 = vand.u32 4294901760, %v83_v1  ;;  %v81_v6 = vld [vmem:[#allocation2 + $0x60] sm:$0xff]  ;;  %v80_v7 = vld [vmem:[#allocation2 + $0x58] sm:$0xff] }
   0xd   :  { %v1269_v5 = vand.u32 4294901760, %v82_v2  ;;  %v79_v8 = vld [vmem:[#allocation2 + $0x50] sm:$0xff]  ;;  %v1271_v9 = vand.u32 4294901760, %v81_v6  ;;  %v1273_v10 = vand.u32 4294901760, %v80_v7  ;;  %v78_v12 = vld [vmem:[#allocation2 + $0x48] sm:$0xff]  ;;  %v77_v13 = vld [vmem:[#allocation2 + $0x40] sm:$0xff] }
   0xe   :  { %v1275_v11 = vand.u32 4294901760, %v79_v8  ;;  %86 = vmatpush.msra.mxu0 %v1265_v3  ;;  %v1279_v14 = vsub.f32 %v84_v0, %v1265_v3  ;;  %v1282_v15 = vsub.f32 %v83_v1, %v1267_v4  ;;  %v76_v17 = vld [vmem:[#allocation2 + $0x38] sm:$0xff]  ;;  %299 = vmatpush.msra.mxu3 %v1265_v3  ;;  %v1288_v18 = vand.u32 4294901760, %v78_v12  ;;  %v75_v25 = vld [vmem:[#allocation2 + $0x30] sm:$0xff]  ;;  %v74_v33 = vld [vmem:[#allocation2 + $0x28] sm:$0xff] }
   0xf   :  { %v1285_v16 = vsub.f32 %v82_v2, %v1269_v5  ;;  %v1291_v19 = vsub.f32 %v81_v6, %v1271_v9  ;;  %v1294_v20 = vsub.f32 %v80_v7, %v1273_v10  ;;  %v1300_v24 = vand.u32 4294901760, %v77_v13  ;;  %v73_v42 = vld [vmem:[#allocation2 + $0x20] sm:$0xff]  ;;  %v72_v46 = vld [vmem:[#allocation2 + $0x18] sm:$0xff]  ;;  %v71_v54 = vld [vmem:[#allocation2 + $0x10] sm:$0xff] }
  0x10   :  { %88 = vmatpush.msra.mxu0 %v1267_v4  ;;  %v136_v21 = vand.u32 4294901760, %v1279_v14  ;;  %v142_v22 = vand.u32 4294901760, %v1282_v15  ;;  %241 = vmatpush.msra.mxu2 %v1279_v14  ;;  %v1304_v27 = vand.u32 4294901760, %v76_v17  ;;  %v1307_v28 = vsub.f32 %v79_v8, %v1275_v11  ;;  %v70_v58 = vld [vmem:[#allocation2 + $0x8] sm:$0xff]  ;;  %v64_v61 = vld [vmem:[%s1786_s0] sm:$0xff] }
  0x11   :  { %v148_v23 = vand.u32 4294901760, %v1285_v16  ;;  %v154_v26 = vand.u32 4294901760, %v1291_v19  ;;  %301 = vmatpush.msra.mxu3 %v1267_v4  ;;  %v160_v32 = vand.u32 4294901760, %v1294_v20  ;;  %v1325_v35 = vand.u32 4294901760, %v75_v25  ;;  %v69_v1 = vld [vmem:[#allocation2] sm:$0xff] }
  0x12   :  { %90 = vmatpush.msra.mxu0 %v1269_v5  ;;  %v137_v29 = vsub.f32 %v1279_v14, %v136_v21  ;;  %v143_v30 = vsub.f32 %v1282_v15, %v142_v22  ;;  %244 = vmatpush.msra.mxu2 %v1282_v15  ;;  %v1328_v36 = vsub.f32 %v78_v12, %v1288_v18  ;;  %v166_v39 = vand.u32 4294901760, %v1307_v28 }
  0x13   :  { %v149_v31 = vsub.f32 %v1285_v16, %v148_v23  ;;  %v155_v34 = vsub.f32 %v1291_v19, %v154_v26  ;;  %303 = vmatpush.msra.mxu3 %v1269_v5  ;;  %v1335_v40 = vsub.f32 %v77_v13, %v1300_v24  ;;  %v1337_v41 = vand.u32 4294901760, %v74_v33 }
  0x14   :  { %92 = vmatpush.msra.mxu0 %v1271_v9  ;;  %v138_v37 = vand.u32 4294901760, %v137_v29  ;;  %v144_v38 = vand.u32 4294901760, %v143_v30  ;;  %247 = vmatpush.msra.mxu2 %v1285_v16  ;;  %v161_v44 = vsub.f32 %v1294_v20, %v160_v32  ;;  %v172_v45 = vand.u32 4294901760, %v1328_v36  ;;  %v65_v30 = vld [vmem:[%s1786_s0 + $0x8] sm:$0xff] }
  0x15   :  { %305 = vmatpush.msra.mxu3 %v1271_v9  ;;  %v150_v43 = vand.u32 4294901760, %v149_v31  ;;  %v1346_v47 = vsub.f32 %v76_v17, %v1304_v27  ;;  %v178_v48 = vand.u32 4294901760, %v1335_v40  ;;  %v156_v49 = vand.u32 4294901760, %v155_v34 }
  0x16   :  { %94 = vmatpush.msra.mxu0 %v1273_v10  ;;  %139 = vmatpush.msra.mxu1 %v138_v37  ;;  %v167_v50 = vsub.f32 %v1307_v28, %v166_v39  ;;  %v1355_v51 = vand.u32 4294901760, %v73_v42  ;;  %v1358_v52 = vsub.f32 %v75_v25, %v1325_v35  ;;  %v1360_v53 = vand.u32 4294901760, %v72_v46 }
  0x17   :  { %250 = vmatpush.msra.mxu2 %v1291_v19  ;;  %307 = vmatpush.msra.mxu3 %v1273_v10  ;;  %v162_v55 = vand.u32 4294901760, %v161_v44  ;;  %v173_v56 = vsub.f32 %v1328_v36, %v172_v45  ;;  %v184_v57 = vand.u32 4294901760, %v1346_v47  ;;  %v1370_v59 = vsub.f32 %v74_v33, %v1337_v41 }
  0x18   :  { %96 = vmatpush.msra.mxu0 %v1275_v11  ;;  %145 = vmatpush.msra.mxu1 %v144_v38  ;;  %v179_v60 = vsub.f32 %v1335_v40, %v178_v48  ;;  %v168_v62 = vand.u32 4294901760, %v167_v50  ;;  %v1381_v63 = vand.u32 4294901760, %v71_v54  ;;  %v190_v0 = vand.u32 4294901760, %v1358_v52 }
  0x19   :  { %253 = vmatpush.msra.mxu2 %v1294_v20  ;;  %309 = vmatpush.msra.mxu3 %v1275_v11  ;;  %v1385_v2 = vsub.f32 %v73_v42, %v1355_v51  ;;  %v1387_v6 = vand.u32 4294901760, %v70_v58  ;;  %v1391_v7 = vsub.f32 %v72_v46, %v1360_v53  ;;  %v174_v8 = vand.u32 4294901760, %v173_v56 }
  0x1a   :  { %98 = vmatpush.msra.mxu0 %v1288_v18  ;;  %151 = vmatpush.msra.mxu1 %v150_v43  ;;  %v185_v12 = vsub.f32 %v1346_v47, %v184_v57  ;;  %v196_v13 = vand.u32 4294901760, %v1370_v59  ;;  %v1399_v17 = vand.u32 4294901760, %v64_v61  ;;  %v180_v25 = vand.u32 4294901760, %v179_v60 }
  0x1b   :  { %256 = vmatpush.msra.mxu2 %v1307_v28  ;;  %311 = vmatpush.msra.mxu3 %v1288_v18  ;;  %v1401_v29 = vand.u32 4294901760, %v69_v1  ;;  %v191_v31 = vsub.f32 %v1358_v52, %v190_v0  ;;  %v202_v33 = vand.u32 4294901760, %v1385_v2  ;;  %v1414_v34 = vsub.f32 %v71_v54, %v1381_v63 }
  0x1c   :  { %100 = vmatpush.msra.mxu0 %v1300_v24  ;;  %157 = vmatpush.msra.mxu1 %v156_v49  ;;  %v1417_v37 = vsub.f32 %v64_v61, %v1399_v17  ;;  %v208_v38 = vand.u32 4294901760, %v1391_v7  ;;  %v1422_v42 = vsub.f32 %v70_v58, %v1387_v6  ;;  %v186_v43 = vand.u32 4294901760, %v185_v12 }
  0x1d   :  { %259 = vmatpush.msra.mxu2 %v1328_v36  ;;  %313 = vmatpush.msra.mxu3 %v1300_v24  ;;  %v197_v44 = vsub.f32 %v1370_v59, %v196_v13  ;;  %v1430_v49 = vand.u32 4294901760, %v65_v30  ;;  %v192_v50 = vand.u32 4294901760, %v191_v31  ;;  %v203_v54 = vsub.f32 %v1385_v2, %v202_v33 }
  0x1e   :  { %102 = vmatpush.msra.mxu0 %v1304_v27  ;;  %163 = vmatpush.msra.mxu1 %v162_v55  ;;  %v119_v46 = vand.u32 4294901760, %v1417_v37  ;;  %v214_v55 = vand.u32 4294901760, %v1414_v34  ;;  %v1440_v56 = vsub.f32 %v69_v1, %v1401_v29  ;;  %v209_v58 = vsub.f32 %v1391_v7, %v208_v38 }
  0x1f   :  { %262 = vmatpush.msra.mxu2 %v1335_v40  ;;  %315 = vmatpush.msra.mxu3 %v1304_v27  ;;  %v198_v60 = vand.u32 4294901760, %v197_v44  ;;  %v220_v61 = vand.u32 4294901760, %v1422_v42  ;;  %v204_v1 = vand.u32 4294901760, %v203_v54  ;;  %v530_v40 = vld [vmem:[#allocation4 + $0x78] sm:$0xff] }
  0x20   :  { %104 = vmatpush.msra.mxu0 %v1325_v35  ;;  %169 = vmatpush.msra.mxu1 %v168_v62  ;;  %v120_v62 = vsub.f32 %v1417_v37, %v119_v46  ;;  %v215_v12 = vsub.f32 %v1414_v34, %v214_v55 }
  0x21   :  { %265 = vmatpush.msra.mxu2 %v1346_v47  ;;  %317 = vmatpush.msra.mxu3 %v1325_v35  ;;  %v221_v31 = vsub.f32 %v1422_v42, %v220_v61  ;;  %v1530_v47 = vand.u32 4294901760, %v530_v40 }
  0x22   :  { %106 = vmatpush.msra.mxu0 %v1337_v41  ;;  %175 = vmatpush.msra.mxu1 %v174_v8  ;;  %v126_v8 = vsub.f32 %v65_v30, %v1430_v49  ;;  %v210_v30 = vand.u32 4294901760, %v209_v58 }
  0x23   :  { %268 = vmatpush.msra.mxu2 %v1358_v52  ;;  %319 = vmatpush.msra.mxu3 %v1337_v41  ;;  %v222_v58 = vand.u32 4294901760, %v221_v31  ;;  %v527_v52 = vld [vmem:[#allocation4 + $0x60] sm:$0xff]  ;;  %v66_v31 = vlaneseq }
  0x24   :  { %108 = vmatpush.msra.mxu0 %v1355_v51  ;;  %181 = vmatpush.msra.mxu1 %v180_v25  ;;  %v226_v25 = vand.u32 4294901760, %v1440_v56  ;;  %v127_v44 = vand.u32 4294901760, %v126_v8 }
  0x25   :  { %271 = vmatpush.msra.mxu2 %v1370_v59  ;;  %321 = vmatpush.msra.mxu3 %v1355_v51  ;;  %v1536_v59 = vand.u32 4294901760, %v527_v52 }
  0x26   :  { %110 = vmatpush.msra.mxu0 %v1360_v53  ;;  %187 = vmatpush.msra.mxu1 %v186_v43  ;;  %v121_v43 = vand.u32 4294901760, %v120_v62  ;;  %v227_v54 = vsub.f32 %v1440_v56, %v226_v25 }
  0x27   :  { %274 = vmatpush.msra.mxu2 %v1385_v2  ;;  %323 = vmatpush.msra.mxu3 %v1360_v53  ;;  %v524_v2 = vld [vmem:[#allocation4 + $0x48] sm:$0xff] }
  0x28   :  { %112 = vmatpush.msra.mxu0 %v1381_v63  ;;  %193 = vmatpush.msra.mxu1 %v192_v50  ;;  %v216_v50 = vand.u32 4294901760, %v215_v12  ;;  %v228_v62 = vand.u32 4294901760, %v227_v54 }
  0x29   :  { %277 = vmatpush.msra.mxu2 %v1391_v7  ;;  %325 = vmatpush.msra.mxu3 %v1381_v63 }
  0x2a   :  { %114 = vmatpush.msra.mxu0 %v1387_v6  ;;  %199 = vmatpush.msra.mxu1 %v198_v60  ;;  %v128_v60 = vsub.f32 %v126_v8, %v127_v44 }
  0x2b   :  { %280 = vmatpush.msra.mxu2 %v1414_v34  ;;  %327 = vmatpush.msra.mxu3 %v1387_v6 }
  0x2c   :  { %116 = vmatpush.msra.mxu0 %v1401_v29  ;;  %205 = vmatpush.msra.mxu1 %v204_v1  ;;  %v129_v14 = vand.u32 4294901760, %v128_v60  ;;  %v1605_v60 = vand.u32 127, %v66_v31 }
  0x2d   :  { %283 = vmatpush.msra.mxu2 %v1422_v42  ;;  %122 = vmatmul.f32.vlgmr.msra.gmra.mxu0 %v121_v43 }
  0x2e   :  { %346 = vmatpush.msrb.mxu0 %v136_v21  ;;  %211 = vmatpush.msra.mxu1 %v210_v30  ;;  %vm68_vm0 = vcmp.lt.s32.totalorder %v1605_v60, 32 }
  0x2f   :  { %286 = vmatpush.msra.mxu2 %v1440_v56  ;;  %329 = vmatpush.msra.mxu3 %v1401_v29 }
  0x30   :  { %350 = vmatpush.msrb.mxu0 %v142_v22  ;;  %217 = vmatpush.msra.mxu1 %v216_v50 }
  0x31   :  { %289 = vmatmul.f32.vlgmr.msra.gmra.mxu2 %v1417_v37  ;;  %333 = vmatmul.f32.vlgmr.msra.gmra.mxu3 %v119_v46 }
  0x32   :  { %354 = vmatpush.msrb.mxu0 %v148_v23  ;;  %223 = vmatpush.msra.mxu1 %v222_v58 }
  0x33   :  { %532 = vmatpush.msrb.mxu2 %v1530_v47 }
  0x34   :  { %358 = vmatpush.msrb.mxu0 %v154_v26  ;;  %229 = vmatpush.msra.mxu1 %v228_v62 }
  0x35   :  { %231 = vmatmul.f32.vlgmr.msra.gmra.mxu1 %v1399_v17  ;;  %130 = vmatmul.f32.gmra.mxu0 %v129_v14 }
  0x36   :  { %362 = vmatpush.msrb.mxu0 %v160_v32  ;;  %417 = vmatpush.msrb.mxu1 %v1265_v3 }
  0x38   :  { %366 = vmatpush.msrb.mxu0 %v166_v39  ;;  %419 = vmatpush.msrb.mxu1 %v1267_v4 }
  0x39   :  { %294 = vmatmul.f32.gmra.mxu2 %v126_v8  ;;  %339 = vmatmul.f32.gmra.mxu3 %v127_v44 }
  0x3a   :  { %370 = vmatpush.msrb.mxu0 %v172_v45  ;;  %421 = vmatpush.msrb.mxu1 %v1269_v5  ;;  %v528_v45 = vld [vmem:[#allocation4 + $0x68] sm:$0xff] }
  0x3c   :  { %374 = vmatpush.msrb.mxu0 %v178_v48  ;;  %423 = vmatpush.msrb.mxu1 %v1271_v9 }
  0x3d   :  { %235 = vmatmul.f32.gmra.mxu1 %v1430_v49 }
  0x3e   :  { %378 = vmatpush.msrb.mxu0 %v184_v57  ;;  %425 = vmatpush.msrb.mxu1 %v1273_v10  ;;  %v525_v57 = vld [vmem:[#allocation4 + $0x50] sm:$0xff] }
  0x40   :  { %382 = vmatpush.msrb.mxu0 %v190_v0  ;;  %427 = vmatpush.msrb.mxu1 %v1275_v11  ;;  %v1540_v0 = vand.u32 4294901760, %v525_v57 }
  0x42   :  { %386 = vmatpush.msrb.mxu0 %v196_v13  ;;  %429 = vmatpush.msrb.mxu1 %v1288_v18  ;;  %v1566_v42 = vsub.f32 %v525_v57, %v1540_v0 }
  0x44   :  { %390 = vmatpush.msrb.mxu0 %v202_v33  ;;  %431 = vmatpush.msrb.mxu1 %v1300_v24  ;;  %v612_v30 = vand.u32 4294901760, %v1566_v42 }
  0x46   :  { %394 = vmatpush.msrb.mxu0 %v208_v38  ;;  %433 = vmatpush.msrb.mxu1 %v1304_v27  ;;  %v613_v58 = vsub.f32 %v1566_v42, %v612_v30 }
  0x48   :  { %398 = vmatpush.msrb.mxu0 %v214_v55  ;;  %435 = vmatpush.msrb.mxu1 %v1325_v35 }
  0x4a   :  { %402 = vmatpush.msrb.mxu0 %v220_v61  ;;  %437 = vmatpush.msrb.mxu1 %v1337_v41  ;;  %v529_v41 = vld [vmem:[#allocation4 + $0x70] sm:$0xff] }
  0x4b   :  { %v1532_v48 = vand.u32 4294901760, %v529_v41 }
  0x4c   :  { %406 = vmatpush.msrb.mxu0 %v226_v25  ;;  %439 = vmatpush.msrb.mxu1 %v1355_v51  ;;  %v1534_v51 = vand.u32 4294901760, %v528_v45 }
  0x4d   :  { %408 = vmatmul.f32.vlgmr.msrb.gmra.mxu0 %v1399_v17  ;;  %v1546_v7 = vsub.f32 %v529_v41, %v1532_v48  ;;  %534 = vmatpush.msrb.mxu2 %v1532_v48 }
  0x4e   :  { %441 = vmatpush.msrb.mxu1 %v1360_v53  ;;  %v526_v53 = vld [vmem:[#allocation4 + $0x58] sm:$0xff]  ;;  %v1549_v13 = vsub.f32 %v528_v45, %v1534_v51 }
  0x4f   :  { %v588_v37 = vand.u32 4294901760, %v1546_v7  ;;  %536 = vmatpush.msrb.mxu2 %v1534_v51 }
  0x50   :  { %443 = vmatpush.msrb.mxu1 %v1381_v63  ;;  %v1538_v63 = vand.u32 4294901760, %v526_v53  ;;  %v594_v38 = vand.u32 4294901760, %v1549_v13 }
  0x51   :  { %v589_v56 = vsub.f32 %v1546_v7, %v588_v37  ;;  %538 = vmatpush.msrb.mxu2 %v1536_v59 }
  0x52   :  { %445 = vmatpush.msrb.mxu1 %v1387_v6  ;;  %v1543_v6 = vsub.f32 %v530_v40, %v1530_v47  ;;  %v1559_v33 = vsub.f32 %v526_v53, %v1538_v63  ;;  %v595_v61 = vsub.f32 %v1549_v13, %v594_v38  ;;  %v519_v53 = vld [vmem:[#allocation4 + $0x20] sm:$0xff] }
  0x53   :  { %v590_v12 = vand.u32 4294901760, %v589_v56  ;;  %540 = vmatpush.msrb.mxu2 %v1538_v63 }
  0x54   :  { %447 = vmatpush.msrb.mxu1 %v1401_v29  ;;  %v1556_v29 = vsub.f32 %v527_v52, %v1536_v59  ;;  %v582_v34 = vand.u32 4294901760, %v1543_v6  ;;  %687 = vmatpush.msra.mxu0 %v1543_v6  ;;  %v606_v8 = vand.u32 4294901760, %v1559_v33  ;;  %v596_v43 = vand.u32 4294901760, %v595_v61 }
  0x55   :  { %412 = vmatmul.f32.gmra.mxu0 %v1430_v49  ;;  %449 = vmatmul.f32.vlgmr.msrb.gmra.mxu1 %v1399_v17  ;;  %v1552_v17 = vand.u32 4294901760, %v524_v2  ;;  %v1668_v61 = vand.u32 4294901760, %v519_v53 }
  0x56   :  { %745 = vmatpush.msra.mxu1 %v1530_v47  ;;  %v600_v46 = vand.u32 4294901760, %v1556_v29  ;;  %v583_v55 = vsub.f32 %v1543_v6, %v582_v34  ;;  %690 = vmatpush.msra.mxu0 %v1546_v7  ;;  %v607_v44 = vsub.f32 %v1559_v33, %v606_v8 }
  0x57   :  { %542 = vmatpush.msrb.mxu2 %v1540_v0 }
  0x58   :  { %747 = vmatpush.msra.mxu1 %v1532_v48  ;;  %v584_v1 = vand.u32 4294901760, %v583_v55  ;;  %v601_v25 = vsub.f32 %v1556_v29, %v600_v46  ;;  %693 = vmatpush.msra.mxu0 %v1549_v13  ;;  %v608_v62 = vand.u32 4294901760, %v607_v44  ;;  %v1679_v44 = vsub.f32 %v519_v53, %v1668_v61 }
  0x59   :  { %544 = vmatpush.msrb.mxu2 %v1552_v17 }
  0x5a   :  { %749 = vmatpush.msra.mxu1 %v1534_v51  ;;  %585 = vmatpush.msrb.mxu3 %v584_v1  ;;  %v602_v54 = vand.u32 4294901760, %v601_v25  ;;  %v518_v1 = vld [vmem:[#allocation4 + $0x18] sm:$0xff] }
  0x5b   :  { %696 = vmatpush.msra.mxu0 %v1556_v29 }
  0x5c   :  { %751 = vmatpush.msra.mxu1 %v1536_v59  ;;  %591 = vmatpush.msrb.mxu3 %v590_v12 }
  0x5d   :  { %453 = vmatmul.f32.gmra.mxu1 %v1430_v49  ;;  %v1571_v49 = vsub.f32 %v524_v2, %v1552_v17  ;;  %699 = vmatpush.msra.mxu0 %v1559_v33 }
  0x5e   :  { %753 = vmatpush.msra.mxu1 %v1538_v63  ;;  %597 = vmatpush.msrb.mxu3 %v596_v43  ;;  %v1675_v43 = vand.u32 4294901760, %v518_v1 }
  0x5f   :  { %v618_v50 = vand.u32 4294901760, %v1571_v49  ;;  %702 = vmatpush.msra.mxu0 %v1566_v42 }
  0x60   :  { %755 = vmatpush.msra.mxu1 %v1540_v0  ;;  %603 = vmatpush.msrb.mxu3 %v602_v54  ;;  %v517_v54 = vld [vmem:[#allocation4 + $0x10] sm:$0xff] }
  0x61   :  { %v619_v14 = vsub.f32 %v1571_v49, %v618_v50  ;;  %705 = vmatpush.msra.mxu0 %v1571_v49 }
  0x62   :  { %757 = vmatpush.msra.mxu1 %v1552_v17  ;;  %609 = vmatpush.msrb.mxu3 %v608_v62 }
  0xaa   :  { %v123_v3 = vpop.f32.mrf.mxu0 }
  0xb2   :  { %v232_v4 = vpop.f32.mrf.mxu1  ;;  %v131_v5 = vpop.f32.mrf.mxu0 }
  0xb3   :  { %v233_v10 = vadd.f32 %v232_v4, %v123_v3 }
  0xb4   :  { %v290_v9 = vpop.f32.mrf.mxu2  ;;  %v334_v11 = vpop.f32.mrf.mxu3 }
  0xb5   :  { %v291_v16 = vadd.f32 %v290_v9, %v233_v10  ;;  %v620_v10 = vand.u32 4294901760, %v619_v14  ;;  %v1687_v14 = vsub.f32 %v518_v1, %v1675_v43 }
  0xb7   :  { %v335_v19 = vadd.f32 %v334_v11, %v291_v16 }
  0xba   :  { %v236_v15 = vpop.f32.mrf.mxu1 }
  0xbb   :  { %v237_v20 = vadd.f32 %v236_v15, %v131_v5  ;;  %v614_v5 = vand.u32 4294901760, %v613_v58 }
  0xbc   :  { %v295_v21 = vpop.f32.mrf.mxu2  ;;  %v340_v27 = vpop.f32.mrf.mxu3 }
  0xbd   :  { %v296_v24 = vadd.f32 %v295_v21, %v237_v20  ;;  %615 = vmatpush.msrb.mxu3 %v614_v5  ;;  %v516_v5 = vld [vmem:[#allocation4 + $0x8] sm:$0xff] }
  0xbf   :  { %v341_v32 = vadd.f32 %v340_v27, %v296_v24  ;;  %621 = vmatpush.msrb.mxu3 %v620_v10  ;;  %v522_v24 = vld [vmem:[#allocation4 + $0x38] sm:$0xff] }
  0xc0   :  { %v1634_v27 = vand.u32 4294901760, %v522_v24 }
  0xca   :  { %v409_v18 = vpop.f32.mrf.mxu0 }
  0xcb   :  { %v410_v22 = vadd.f32 %v409_v18, %v335_v19 }
  0xd2   :  { %v450_v23 = vpop.f32.mrf.mxu1  ;;  %v413_v28 = vpop.f32.mrf.mxu0 }
  0xd3   :  { %v1524_v26 = vadd.f32 %v450_v23, %v410_v22  ;;  %v414_v35 = vadd.f32 %v413_v28, %v341_v32  ;;  %v523_v22 = vld [vmem:[#allocation4 + $0x40] sm:$0xff]  ;;  %v521_v28 = vld [vmem:[#allocation4 + $0x30] sm:$0xff] }
  0xd4   :  { %v1629_v23 = vand.u32 4294901760, %v523_v22 }
  0xd5   :  { %459 = vadd.xlane.f32.xlu0 %v1524_v26 }
  0xd6   :  { %546 = vmatpush.msrb.mxu2 %v1629_v23  ;;  %759 = vmatpush.msra.mxu1 %v1629_v23 }
  0xd8   :  { %548 = vmatpush.msrb.mxu2 %v1634_v27  ;;  %761 = vmatpush.msra.mxu1 %v1634_v27 }
  0xda   :  { %v454_v36 = vpop.f32.mrf.mxu1 }
  0xdb   :  { %v1527_v39 = vadd.f32 %v454_v36, %v414_v35  ;;  %v1640_v35 = vsub.f32 %v522_v24, %v1634_v27  ;;  %v1642_v36 = vand.u32 4294901760, %v521_v28 }
  0xdd   :  { %461 = vadd.xlane.f32.xlu0 %v1527_v39  ;;  %v630_v41 = vand.u32 4294901760, %v1640_v35  ;;  %v1652_v45 = vsub.f32 %v521_v28, %v1642_v36  ;;  %550 = vmatpush.msrb.mxu2 %v1642_v36 }
  0xde   :  { %763 = vmatpush.msra.mxu1 %v1642_v36 }
  0xdf   :  { %v631_v2 = vsub.f32 %v1640_v35, %v630_v41  ;;  %v636_v55 = vand.u32 4294901760, %v1652_v45 }
  0xe1   :  { %v632_v12 = vand.u32 4294901760, %v631_v2  ;;  %v637_v25 = vsub.f32 %v1652_v45, %v636_v55 }
  0xe3   :  { %v638_v58 = vand.u32 4294901760, %v637_v25 }
 0x148   :  { %v460_v3 = vpop.xlane.xlu0 %459 }
 0x149   :  { %v463_v4 = vmul.f32 0.03125, %v460_v3  ;;  %v1689_v3 = vand.u32 4294901760, %v517_v54 }
 0x14b   :  { %v1618_v9 = vsub.f32 %v1524_v26, %v463_v4  ;;  %v1632_v26 = vsub.f32 %v523_v22, %v1629_v23  ;;  %v648_v4 = vand.u32 4294901760, %v1679_v44 }
 0x14d   :  { %v469_v11 = vsel %vm68_vm0, %v1618_v9, 0.0  ;;  %v624_v32 = vand.u32 4294901760, %v1632_v26  ;;  %708 = vmatpush.msra.mxu0 %v1632_v26 }
 0x14e   :  { %v471_v15 = vmul.f32 %v469_v11, %v469_v11  ;;  %v654_v11 = vand.u32 4294901760, %v1687_v14 }
 0x14f   :  { %v625_v40 = vsub.f32 %v1632_v26, %v624_v32  ;;  %711 = vmatpush.msra.mxu0 %v1640_v35 }
 0x150   :  { %473 = vadd.xlane.f32.xlu1 %v471_v15  ;;  %v462_v16 = vpop.xlane.xlu0 %461  ;;  %v1696_v15 = vsub.f32 %v517_v54, %v1689_v3 }
 0x151   :  { %v464_v18 = vmul.f32 0.03125, %v462_v16  ;;  %v626_v57 = vand.u32 4294901760, %v625_v40  ;;  %714 = vmatpush.msra.mxu0 %v1652_v45  ;;  %v1698_v16 = vand.u32 4294901760, %v516_v5 }
 0x152   :  { %v660_v22 = vand.u32 4294901760, %v1696_v15 }
 0x153   :  { %v1624_v19 = vsub.f32 %v1527_v39, %v464_v18  ;;  %v520_v39 = vld [vmem:[#allocation4 + $0x28] sm:$0xff]  ;;  %627 = vmatpush.msrb.mxu3 %v626_v57  ;;  %v649_v18 = vsub.f32 %v1679_v44, %v648_v4  ;;  %v665_v24 = vsub.f32 %v516_v5, %v1698_v16 }
 0x154   :  { %v1654_v52 = vand.u32 4294901760, %v520_v39  ;;  %v661_v53 = vsub.f32 %v1696_v15, %v660_v22 }
 0x155   :  { %v470_v20 = vsel %vm68_vm0, %v1624_v19, 0.0  ;;  %633 = vmatpush.msrb.mxu3 %v632_v12  ;;  %v666_v57 = vand.u32 4294901760, %v665_v24 }
 0x156   :  { %v472_v21 = vmul.f32 %v470_v20, %v470_v20  ;;  %v1664_v56 = vsub.f32 %v520_v39, %v1654_v52  ;;  %552 = vmatpush.msrb.mxu2 %v1654_v52  ;;  %765 = vmatpush.msra.mxu1 %v1654_v52  ;;  %v515_v20 = vld [vmem:[#allocation4] sm:$0xff]  ;;  %v650_v39 = vand.u32 4294901760, %v649_v18  ;;  %v662_v1 = vand.u32 4294901760, %v661_v53 }
 0x157   :  { %639 = vmatpush.msrb.mxu3 %v638_v58  ;;  %v1709_v28 = vand.u32 4294901760, %v515_v20  ;;  %v667_v12 = vsub.f32 %v665_v24, %v666_v57 }
 0x158   :  { %475 = vadd.xlane.f32.xlu1 %v472_v21  ;;  %v642_v31 = vand.u32 4294901760, %v1664_v56  ;;  %717 = vmatpush.msra.mxu0 %v1664_v56  ;;  %v655_v21 = vsub.f32 %v1687_v14, %v654_v11 }
 0x159   :  { %554 = vmatpush.msrb.mxu2 %v1668_v61  ;;  %767 = vmatpush.msra.mxu1 %v1668_v61  ;;  %v671_v2 = vsub.f32 %v515_v20, %v1709_v28  ;;  %v668_v54 = vand.u32 4294901760, %v667_v12 }
 0x15a   :  { %v643_v62 = vsub.f32 %v1664_v56, %v642_v31  ;;  %720 = vmatpush.msra.mxu0 %v1679_v44  ;;  %v656_v40 = vand.u32 4294901760, %v655_v21 }
 0x15b   :  { %556 = vmatpush.msrb.mxu2 %v1675_v43  ;;  %769 = vmatpush.msra.mxu1 %v1675_v43  ;;  %v672_v25 = vand.u32 4294901760, %v671_v2 }
 0x15c   :  { %v644_v10 = vand.u32 4294901760, %v643_v62  ;;  %723 = vmatpush.msra.mxu0 %v1687_v14 }
 0x15d   :  { %558 = vmatpush.msrb.mxu2 %v1689_v3  ;;  %771 = vmatpush.msra.mxu1 %v1689_v3  ;;  %v673_v58 = vsub.f32 %v671_v2, %v672_v25 }
 0x15e   :  { %645 = vmatpush.msrb.mxu3 %v644_v10  ;;  %726 = vmatpush.msra.mxu0 %v1696_v15 }
 0x15f   :  { %560 = vmatpush.msrb.mxu2 %v1698_v16  ;;  %773 = vmatpush.msra.mxu1 %v1698_v16  ;;  %v674_v62 = vand.u32 4294901760, %v673_v58 }
 0x160   :  { %651 = vmatpush.msrb.mxu3 %v650_v39  ;;  %729 = vmatpush.msra.mxu0 %v665_v24 }
 0x161   :  { %562 = vmatpush.msrb.mxu2 %v1709_v28  ;;  %775 = vmatpush.msra.mxu1 %v1709_v28 }
 0x162   :  { %657 = vmatpush.msrb.mxu3 %v656_v40  ;;  %732 = vmatpush.msra.mxu0 %v671_v2 }
 0x163   :  { %792 = vmatpush.msra.mxu2 %v582_v34 }
 0x164   :  { %663 = vmatpush.msrb.mxu3 %v662_v1 }
 0x165   :  { %796 = vmatpush.msra.mxu2 %v588_v37 }
 0x166   :  { %669 = vmatpush.msrb.mxu3 %v668_v54 }
 0x167   :  { %800 = vmatpush.msra.mxu2 %v594_v38  ;;  %v1140_v38 = vld [vmem:[%s1788_s2] ss:$0 sm:$0xff] }
 0x168   :  { %675 = vmatpush.msrb.mxu3 %v674_v62 }
 0x169   :  { %804 = vmatpush.msra.mxu2 %v600_v46 }
 0x16a   :  { %863 = vmatpush.msra.mxu3 %v1530_v47 }
 0x16b   :  { %808 = vmatpush.msra.mxu2 %v606_v8  ;;  %v1141_v8 = vld [vmem:[%s1789_s3] ss:$0 sm:$0xff] }
 0x16c   :  { %865 = vmatpush.msra.mxu3 %v1532_v48 }
 0x16d   :  { %812 = vmatpush.msra.mxu2 %v612_v30 }
 0x16e   :  { %867 = vmatpush.msra.mxu3 %v1534_v51 }
 0x16f   :  { %816 = vmatpush.msra.mxu2 %v618_v50 }
 0x170   :  { %869 = vmatpush.msra.mxu3 %v1536_v59 }
 0x171   :  { %820 = vmatpush.msra.mxu2 %v624_v32 }
 0x172   :  { %871 = vmatpush.msra.mxu3 %v1538_v63 }
 0x173   :  { %824 = vmatpush.msra.mxu2 %v630_v41 }
 0x174   :  { %873 = vmatpush.msra.mxu3 %v1540_v0 }
 0x175   :  { %828 = vmatpush.msra.mxu2 %v636_v55 }
 0x176   :  { %875 = vmatpush.msra.mxu3 %v1552_v17 }
 0x177   :  { %832 = vmatpush.msra.mxu2 %v642_v31 }
 0x178   :  { %877 = vmatpush.msra.mxu3 %v1629_v23 }
 0x179   :  { %836 = vmatpush.msra.mxu2 %v648_v4 }
 0x17a   :  { %879 = vmatpush.msra.mxu3 %v1634_v27 }
 0x17b   :  { %840 = vmatpush.msra.mxu2 %v654_v11 }
 0x17c   :  { %881 = vmatpush.msra.mxu3 %v1642_v36 }
 0x17d   :  { %844 = vmatpush.msra.mxu2 %v660_v22 }
 0x17e   :  { %883 = vmatpush.msra.mxu3 %v1654_v52 }
 0x17f   :  { %848 = vmatpush.msra.mxu2 %v666_v57 }
 0x180   :  { %885 = vmatpush.msra.mxu3 %v1668_v61 }
 0x181   :  { %852 = vmatpush.msra.mxu2 %v672_v25 }
 0x182   :  { %887 = vmatpush.msra.mxu3 %v1675_v43 }
 0x184   :  { %889 = vmatpush.msra.mxu3 %v1689_v3 }
 0x186   :  { %891 = vmatpush.msra.mxu3 %v1698_v16 }
 0x188   :  { %893 = vmatpush.msra.mxu3 %v1709_v28 }
 0x1c3   :  { %v474_v47 = vpop.xlane.xlu1 %473 }
 0x1c4   :  { %v477_v48 = vmul.f32 0.03125, %v474_v47 }
 0x1c6   :  { %v479_v51 = vadd.f32 1e-05, %v477_v48 }
 0x1c8   :  { %1144 = vrsqrt.f32 %v479_v51  ;;  %vm487_vm2 = vweird.f32 %v479_v51 }
 0x1cb   :  { %v476_v59 = vpop.xlane.xlu1 %475 }
 0x1cc   :  { %v478_v63 = vmul.f32 0.03125, %v476_v59 }
 0x1ce   :  { %v1145_v0 = vpop.eup %1144  ;;  %v480_v6 = vadd.f32 1e-05, %v478_v63 }
 0x1cf   :  { %v482_v7 = vmul.f32 %v1145_v0, %v479_v51  ;;  %vm488_vm1 = vweird.f32 %v1145_v0 }
 0x1d0   :  { %1146 = vrsqrt.f32 %v480_v6  ;;  %vm489_vm3 = vmor %vm487_vm2, %vm488_vm1  ;;  %vm497_vm5 = vweird.f32 %v480_v6 }
 0x1d1   :  { %v483_v13 = vmul.f32 %v1145_v0, %v482_v7 }
 0x1d3   :  { %v484_v17 = vmul.f32 0.5, %v483_v13 }
 0x1d5   :  { %v485_v29 = vsub.f32 1.5, %v484_v17 }
 0x1d6   :  { %v1147_v33 = vpop.eup %1146 }
 0x1d7   :  { %v486_v34 = vmul.f32 %v1145_v0, %v485_v29  ;;  %v492_v37 = vmul.f32 %v1147_v33, %v480_v6  ;;  %vm498_vm4 = vweird.f32 %v1147_v33 }
 0x1d8   :  { %vm499_vm6 = vmor %vm497_vm5, %vm498_vm4 }
 0x1d9   :  { %v490_v42 = vsel %vm489_vm3, %v1145_v0, %v486_v34  ;;  %v493_v46 = vmul.f32 %v1147_v33, %v492_v37 }
 0x1da   :  { %v501_v49 = vmul.f32 %v490_v42, %v1618_v9 }
 0x1db   :  { %v494_v30 = vmul.f32 0.5, %v493_v46 }
 0x1dc   :  { %v506_v50 = vmul.f32 %v1140_v38, %v501_v49 }
 0x1dd   :  { %v495_v23 = vsub.f32 1.5, %v494_v30 }
 0x1de   :  { %v511_v26 = vadd.f32 %v1141_v8, %v506_v50 }
 0x1df   :  { %v496_v27 = vmul.f32 %v1147_v33, %v495_v23 }
 0x1e0   :  { %v513_v32 = vmax.f32 %v511_v26, 0.0  ;;  %v1142_v26 = vld [vmem:[%s1791_s5] ss:$0 sm:$0xff] }
 0x1e1   :  { %v500_v35 = vsel %vm499_vm6, %v1147_v33, %v496_v27  ;;  %v959_v27 = vld [vmem:[%s1793_s7] sm:$0xff] }
 0x1e2   :  { %v502_v36 = vmul.f32 %v500_v35, %v1624_v19  ;;  %v563_v41 = vand.u32 4294901760, %v513_v32 }
 0x1e4   :  { %v507_v45 = vmul.f32 %v1140_v38, %v502_v36  ;;  %677 = vmatmul.f32.vlgmr.msrb.gmra.mxu3 %v563_v41  ;;  %v564_v9 = vsub.f32 %v513_v32, %v563_v41 }
 0x1e6   :  { %735 = vmatmul.f32.vlgmr.msra.gmra.mxu0 %v564_v9  ;;  %v565_v52 = vand.u32 4294901760, %v564_v9  ;;  %v512_v55 = vadd.f32 %v1141_v8, %v507_v45 }
 0x1e8   :  { %779 = vmatmul.f32.vlgmr.msra.gmra.mxu1 %v565_v52  ;;  %v566_v56 = vsub.f32 %v564_v9, %v565_v52  ;;  %v514_v61 = vmax.f32 %v512_v55, 0.0  ;;  %v984_v9 = vand.u32 4294901760, %v959_v27 }
 0x1ea   :  { %v567_v31 = vand.u32 4294901760, %v566_v56  ;;  %v571_v43 = vand.u32 4294901760, %v514_v61 }
 0x1ec   :  { %568 = vmatmul.f32.vlgmr.msrb.gmra.mxu2 %v567_v31  ;;  %681 = vmatmul.f32.gmra.mxu3 %v571_v43  ;;  %v572_v44 = vsub.f32 %v514_v61, %v571_v43  ;;  %v985_v31 = vsub.f32 %v959_v27, %v984_v9 }
 0x1ee   :  { %740 = vmatmul.f32.gmra.mxu0 %v572_v44  ;;  %v573_v14 = vand.u32 4294901760, %v572_v44 }
 0x1f0   :  { %785 = vmatmul.f32.gmra.mxu1 %v573_v14  ;;  %v574_v3 = vsub.f32 %v572_v44, %v573_v14  ;;  %v1208_v14 = vmov 0  }
 0x1f1   :  { %1138 = vset.pattern.permute.xlu2 %v1208_v14  ;;  %1139 = vset.pattern.permute.xlu0 %v1208_v14 }
 0x1f2   :  { %v575_v19 = vand.u32 4294901760, %v574_v3 }
 0x1f4   :  { %576 = vmatmul.f32.gmra.mxu2 %v575_v19  ;;  %895 = vmatmul.f32.vlgmr.msra.gmra.mxu3 %v563_v41 }
 0x1fc   :  { %854 = vmatmul.f32.vlgmr.msra.gmra.mxu2 %v563_v41  ;;  %899 = vmatmul.f32.gmra.mxu3 %v571_v43  ;;  %v1143_v41 = vld [vmem:[%s1792_s6] ss:$0 sm:$0xff] }
 0x204   :  { %858 = vmatmul.f32.gmra.mxu2 %v571_v43  ;;  %v960_v43 = vld [vmem:[%s1794_s8] sm:$0xff] }
 0x263   :  { %v736_v11 = vpop.f32.mrf.mxu0 }
 0x265   :  { %v780_v16 = vpop.f32.mrf.mxu1 }
 0x267   :  { %v678_v4 = vpop.f32.mrf.mxu3 }
 0x26b   :  { %v741_v22 = vpop.f32.mrf.mxu0 }
 0x26d   :  { %v786_v39 = vpop.f32.mrf.mxu1 }
 0x26f   :  { %v569_v5 = vpop.f32.mrf.mxu2  ;;  %v682_v10 = vpop.f32.mrf.mxu3 }
 0x270   :  { %v679_v28 = vadd.f32 %v678_v4, %v569_v5  ;;  %v986_v5 = vand.u32 4294901760, %v985_v31 }
 0x272   :  { %v737_v57 = vadd.f32 %v736_v11, %v679_v28 }
 0x274   :  { %v781_v25 = vadd.f32 %v780_v16, %v737_v57 }
 0x277   :  { %v577_v15 = vpop.f32.mrf.mxu2  ;;  %v896_v20 = vpop.f32.mrf.mxu3 }
 0x278   :  { %v683_v18 = vadd.f32 %v682_v10, %v577_v15 }
 0x27a   :  { %v742_v24 = vadd.f32 %v741_v22, %v683_v18  ;;  %v987_v18 = vsub.f32 %v985_v31, %v986_v5 }
 0x27c   :  { %v787_v40 = vadd.f32 %v786_v39, %v742_v24  ;;  %v988_v28 = vand.u32 4294901760, %v987_v18 }
 0x27f   :  { %v855_v21 = vpop.f32.mrf.mxu2  ;;  %v900_v1 = vpop.f32.mrf.mxu3 }
 0x280   :  { %v856_v54 = vadd.f32 %v855_v21, %v781_v25 }
 0x282   :  { %v897_v58 = vadd.f32 %v896_v20, %v856_v54 }
 0x287   :  { %v859_v53 = vpop.f32.mrf.mxu2 }
 0x288   :  { %v860_v2 = vadd.f32 %v859_v53, %v787_v40 }
 0x28a   :  { %v901_v12 = vadd.f32 %v900_v1, %v860_v2 }
 0x28c   :  { %907 = vadd.xlane.f32.xlu2 %v901_v12 }
 0x294   :  { %905 = vadd.xlane.f32.xlu2 %v897_v58 }
 0x2ac   :  { %963 = vperm.xlu2 %1138, %v960_v43  }
 0x2ff   :  { %v908_v62 = vpop.xlane.xlu2 %907 }
 0x300   :  { %v910_v47 = vmul.f32 0.03125, %v908_v62 }
 0x302   :  { %v912_v48 = vsub.f32 %v901_v12, %v910_v47 }
 0x304   :  { %v914_v51 = vsel %vm68_vm0, %v912_v48, 0.0 }
 0x305   :  { %v916_v59 = vmul.f32 %v914_v51, %v914_v51 }
 0x307   :  { %919 = vadd.xlane.f32.xlu0 %v916_v59  ;;  %v906_v63 = vpop.xlane.xlu2 %905 }
 0x308   :  { %v909_v0 = vmul.f32 0.03125, %v906_v63 }
 0x30a   :  { %v911_v6 = vsub.f32 %v897_v58, %v909_v0 }
 0x30c   :  { %v913_v7 = vsel %vm68_vm0, %v911_v6, 0.0 }
 0x30d   :  { %v915_v13 = vmul.f32 %v913_v7, %v913_v7 }
 0x30f   :  { %917 = vadd.xlane.f32.xlu1 %v915_v13  ;;  %v964_v1 = vpop.permute.xlu2 %963 }
 0x37a   :  { %v920_v17 = vpop.xlane.xlu0 %919 }
 0x37b   :  { %v922_v29 = vmul.f32 0.03125, %v920_v17 }
 0x37d   :  { %v924_v33 = vadd.f32 1e-05, %v922_v29 }
 0x37f   :  { %1148 = vrsqrt.f32 %v924_v33  ;;  %vm941_vm8 = vweird.f32 %v924_v33 }
 0x382   :  { %v918_v34 = vpop.xlane.xlu1 %917 }
 0x383   :  { %v921_v37 = vmul.f32 0.03125, %v918_v34 }
 0x385   :  { %v1149_v38 = vpop.eup %1148  ;;  %v923_v42 = vadd.f32 1e-05, %v921_v37 }
 0x386   :  { %v936_v46 = vmul.f32 %v1149_v38, %v924_v33  ;;  %vm942_vm7 = vweird.f32 %v1149_v38 }
 0x387   :  { %1150 = vrsqrt.f32 %v923_v42  ;;  %vm943_vm9 = vmor %vm941_vm8, %vm942_vm7  ;;  %vm931_vm11 = vweird.f32 %v923_v42 }
 0x388   :  { %v937_v49 = vmul.f32 %v1149_v38, %v936_v46 }
 0x38a   :  { %v938_v8 = vmul.f32 0.5, %v937_v49 }
 0x38c   :  { %v939_v30 = vsub.f32 1.5, %v938_v8 }
 0x38d   :  { %v1151_v50 = vpop.eup %1150 }
 0x38e   :  { %v940_v23 = vmul.f32 %v1149_v38, %v939_v30  ;;  %v926_v60 = vmul.f32 %v1151_v50, %v923_v42  ;;  %vm932_vm10 = vweird.f32 %v1151_v50 }
 0x38f   :  { %vm933_vm12 = vmor %vm931_vm11, %vm932_vm10 }
 0x390   :  { %v944_v32 = vsel %vm943_vm9, %v1149_v38, %v940_v23  ;;  %v927_v35 = vmul.f32 %v1151_v50, %v926_v60 }
 0x391   :  { %v946_v36 = vmul.f32 %v944_v32, %v912_v48 }
 0x392   :  { %v928_v45 = vmul.f32 0.5, %v927_v35 }
 0x393   :  { %v951_v52 = vmul.f32 %v1142_v26, %v946_v36 }
 0x394   :  { %v929_v55 = vsub.f32 1.5, %v928_v45 }
 0x395   :  { %v956_v56 = vadd.f32 %v1143_v41, %v951_v52 }
 0x396   :  { %v930_v61 = vmul.f32 %v1151_v50, %v929_v55 }
 0x397   :  { %v958_v44 = vmax.f32 %v956_v56, 0.0 }
 0x398   :  { %v934_v3 = vsel %vm933_vm12, %v1151_v50, %v930_v61 }
 0x399   :  { %v945_v19 = vmul.f32 %v934_v3, %v911_v6  ;;  %v980_v4 = vand.u32 4294901760, %v958_v44 }
 0x39b   :  { %v950_v10 = vmul.f32 %v1142_v26, %v945_v19  ;;  %981 = vmatpush.xpose.msrb.mxu0 %v980_v4  ;;  %1065 = vmatpush.xpose.msrb.mxu3 %v980_v4  ;;  %v1008_v11 = vsub.f32 %v958_v44, %v980_v4 }
 0x39d   :  { %1040 = vmatpush.xpose.msrb.mxu2 %v1008_v11  ;;  %v955_v15 = vadd.f32 %v1143_v41, %v950_v10  ;;  %v1009_v16 = vand.u32 4294901760, %v1008_v11 }
 0x39f   :  { %v957_v20 = vmax.f32 %v955_v15, 0.0  ;;  %v1010_v21 = vsub.f32 %v1008_v11, %v1009_v16 }
 0x3a1   :  { %v982_v22 = vand.u32 4294901760, %v957_v20  ;;  %v1011_v24 = vand.u32 4294901760, %v1010_v21 }
 0x3a3   :  { %983 = vmatpush.xpose.msrb.mxu0 %v982_v22  ;;  %1012 = vmatpush.xpose.msrb.mxu1 %v1011_v24  ;;  %v1014_v39 = vsub.f32 %v957_v20, %v982_v22 }
 0x3a4   :  { %1067 = vmatpush.xpose.msrb.mxu3 %v982_v22 }
 0x3a5   :  { %1043 = vmatpush.xpose.msrb.mxu2 %v1014_v39  ;;  %v1015_v40 = vand.u32 4294901760, %v1014_v39 }
 0x3a6   :  { %989 = vmatmul.f32.vlgmr.msrb.gmra.mxu0 %v988_v28 }
 0x3a7   :  { %1092 = vmatpush.xpose.msra.mxu0 %v1009_v16  ;;  %v1016_v53 = vsub.f32 %v1014_v39, %v1015_v40  ;;  %1071 = vmatmul.f32.vlgmr.msrb.gmra.mxu3 %v986_v5 }
 0x3a8   :  { %1046 = vmatmul.f32.vlgmr.msrb.gmra.mxu2 %v985_v31 }
 0x3a9   :  { %v1017_v57 = vand.u32 4294901760, %v1016_v53 }
 0x3ab   :  { %1096 = vmatpush.xpose.msra.mxu0 %v1015_v40  ;;  %1018 = vmatpush.xpose.msrb.mxu1 %v1017_v57 }
 0x3ae   :  { %1020 = vmatmul.f32.vlgmr.msrb.gmra.mxu1 %v984_v9  ;;  %1098 = vmatmul.f32.vlgmr.msra.gmra.mxu0 %v984_v9 }
 0x3af   :  { %1117 = vmatpush.xpose.msra.mxu1 %v980_v4 }
 0x3b3   :  { %1119 = vmatpush.xpose.msra.mxu1 %v982_v22 }
 0x3b6   :  { %1121 = vmatmul.f32.vlgmr.msra.gmra.mxu1 %v984_v9 }
 0x423   :  { %v990_v2 = vpop.f32.mrf.mxu0 }
 0x424   :  { %v991_v12 = vadd.f32 %v990_v2, %v964_v1 }
 0x42a   :  { %v1072_v62 = vpop.f32.mrf.mxu3 }
 0x42b   :  { %v1021_v25 = vpop.f32.mrf.mxu1  ;;  %v1047_v54 = vpop.f32.mrf.mxu2 }
 0x42c   :  { %v1022_v58 = vadd.f32 %v1021_v25, %v991_v12  ;;  %v1099_v48 = vpop.f32.mrf.mxu0 }
 0x42e   :  { %v1048_v47 = vadd.f32 %v1047_v54, %v1022_v58 }
 0x430   :  { %v1073_v51 = vadd.f32 %v1072_v62, %v1048_v47 }
 0x432   :  { %v1100_v59 = vadd.f32 %v1099_v48, %v1073_v51 }
 0x433   :  { %v1122_v63 = vpop.f32.mrf.mxu1 }
 0x434   :  { %v1123_v0 = vadd.f32 %v1122_v63, %v1100_v59 }
 0x436   :  { %1126 = vst.msk [vmem:[%s1795_s9] sm:$0xff] %vm1125_vm13, %v1123_v0 }
 0x437   :  { %1131 = vsyncpa [#allocation3], 1 }
 0x438   :  { %1132 = vsyncpa [#allocation5], 1 }

</bundles_post_ra>
